<compile_context>
chip_gen: v6e
topology: v6e:2x2x1
jax: 0.10.0
libtpu: 0.0.40
codegen_flags: <defaults>
</compile_context>

<pallas_src>
import functools

import jax
import jax.numpy as jnp
from jax import lax
from jax.experimental import pallas as pl
from jax.experimental.pallas import tpu as pltpu

GAMMA = 1.5
ALPHA = 0.25
LANES = 128
SUBLANES = 8
TILE_ROWS = 4096                    # (4096,128) f32 = 2 MiB per input per block
SINGLE_BLOCK_MAX_ROWS = TILE_ROWS   # <= 2 MiB / input: skip the grid entirely
NUM_SPLITS = 2                      # leading "parallel" axis (v7x megacore; harmless on 1-TC chips)
TILE_ELEMS = TILE_ROWS * LANES


def _focal_bce_elementwise(x, t, gamma, alpha):
    """Elementwise QFocal-weighted BCE-with-logits (f32 in/out). Shares one exp."""
    e = jnp.exp(-jnp.abs(x))                                  # single EUP exp, reused
    bce = jnp.maximum(x, 0.0) - x * t + jnp.log1p(e)          # stable BCEWithLogits (reduction='none')
    inv = 1.0 / (1.0 + e)                                     # exact reciprocal (EUP + NR refine)
    p = jnp.where(x >= 0, inv, e * inv)                       # sigmoid(x) from the shared exp
    alpha_factor = t * (2.0 * alpha - 1.0) + (1.0 - alpha)    # fused multiply-add form
    d = jnp.abs(t - p)
    mod = d * jnp.sqrt(d) if gamma == 1.5 else d ** gamma     # gamma=1.5 -> d*sqrt(d), exact
    return bce * alpha_factor * mod


def _tail_mask(shape, valid_count):
    """Select-mask for the first `valid_count` elements of a row-major (rows,128) tile."""
    rows = lax.broadcasted_iota(jnp.int32, shape, 0)
    cols = lax.broadcasted_iota(jnp.int32, shape, 1)
    return (rows * LANES + cols) < valid_count                # valid_count is a Python int


def _qfocal_single_kernel(pred_ref, true_ref, out_ref, *, gamma, alpha,
                          total_elems, padded):
    """Grid-less path: whole (rows, 128) slab is a single VMEM block."""
    x = pred_ref[...].astype(jnp.float32)
    t = true_ref[...].astype(jnp.float32)
    loss = _focal_bce_elementwise(x, t, gamma, alpha)
    if padded:  # static Python branch: only emitted when a <128-element lane pad exists
        loss = jnp.where(_tail_mask(loss.shape, total_elems), loss, 0.0)
    out_ref[...] = jnp.sum(loss, keepdims=True) * (1.0 / total_elems)


def _qfocal_tiled_kernel(pred_ref, true_ref, out_ref, *, gamma, alpha,
                         steps_per_split, last_tile, tail_valid):
    """Tiled path: per-tile (8,128) partial sums accumulated in the resident out block."""
    c = pl.program_id(0)          # split index ("parallel"; one per TensorCore on v7x)
    i = pl.program_id(1)          # streaming/reduction step within the split ("arbitrary")
    tile = c * steps_per_split + i

    @pl.when(i == 0)
    def _():
        out_ref[...] = jnp.zeros_like(out_ref)

    x = pred_ref[...].astype(jnp.float32)
    t = true_ref[...].astype(jnp.float32)
    loss = _focal_bce_elementwise(x, t, gamma, alpha)

    # Interior tiles: unmasked accumulate (pure VPU; reduction to one vreg per step).
    @pl.when(tile < last_tile)
    def _():
        out_ref[...] += loss.reshape(-1, SUBLANES, LANES).sum(axis=0)

    # Last real tile: mask only if it is partial (overhang rows / lane-pad tail).
    @pl.when(tile == last_tile)
    def _():
        tail = loss
        if tail_valid < TILE_ELEMS:  # static: the array does not fill the last tile
            # Must stay a select: the overhanging block region holds unspecified VMEM
            # data (possibly NaN/Inf) that must not reach the sum.
            tail = jnp.where(_tail_mask(loss.shape, tail_valid), loss, 0.0)
        out_ref[...] += tail.reshape(-1, SUBLANES, LANES).sum(axis=0)

    # Phantom step (odd tile count only): tile > last_tile -> no accumulate.


def qfocal_loss(pred, true, *, gamma=GAMMA, alpha=ALPHA):
    """pred, true: identical shapes, any layout (e.g. NCHW (2,4,16,16)); reduction='mean'."""
    assert pred.shape == true.shape
    total = pred.size

    # Flatten to a lane-dense (rows, 128) slab. Pure reshape of a contiguous array;
    # no dtype upcast (bf16 stays bf16 in HBM, cast to f32 on the VPU in-kernel).
    pred_flat = pred.reshape(-1)
    true_flat = true.reshape(-1)

    lane_pad = (-total) % LANES
    if lane_pad:
        # Rare ragged-lane case: pad with <128 zeros so the slab is rectangular.
        # TODO(synk): handle the <128-element tail with a separate tiny add to avoid the
        # full-array copy jnp.pad implies.
        pred_flat = jnp.pad(pred_flat, (0, lane_pad))
        true_flat = jnp.pad(true_flat, (0, lane_pad))
    rows = (total + lane_pad) // LANES
    pred2 = pred_flat.reshape(rows, LANES)
    true2 = true_flat.reshape(rows, LANES)

    if rows <= SINGLE_BLOCK_MAX_ROWS:
        # Single invocation, no grid, no scratch, no init/finalize branches.
        kernel = functools.partial(_qfocal_single_kernel, gamma=gamma, alpha=alpha,
                                   total_elems=total, padded=bool(lane_pad))
        out = pl.pallas_call(
            kernel,
            out_shape=jax.ShapeDtypeStruct((1, 1), jnp.float32),
        )(pred2, true2)
        return out[0, 0]

    # ---- Tiled streaming path (rows > TILE_ROWS) ----
    total_tiles = pl.cdiv(rows, TILE_ROWS)                     # >= 2 here
    steps_per_split = pl.cdiv(total_tiles, NUM_SPLITS)
    last_tile = total_tiles - 1
    tail_valid = total - last_tile * TILE_ELEMS                # Python int in (0, TILE_ELEMS]
    has_phantom = steps_per_split * NUM_SPLITS > total_tiles   # odd tile count

    def row_map(c, i):
        t = c * steps_per_split + i
        if has_phantom:
            # Clamp the phantom step to the last real tile so no fully-OOB block is
            # ever fetched; the kernel skips its accumulation.
            t = jnp.minimum(t, last_tile)
        return (t, 0)

    kernel = functools.partial(_qfocal_tiled_kernel, gamma=gamma, alpha=alpha,
                               steps_per_split=steps_per_split, last_tile=last_tile,
                               tail_valid=tail_valid)
    out = pl.pallas_call(
        kernel,
        out_shape=jax.ShapeDtypeStruct((NUM_SPLITS * SUBLANES, LANES), jnp.float32),
        grid_spec=pltpu.PrefetchScalarGridSpec(
            num_scalar_prefetch=0,
            grid=(NUM_SPLITS, steps_per_split),
            in_specs=[
                pl.BlockSpec((TILE_ROWS, LANES), row_map),
                pl.BlockSpec((TILE_ROWS, LANES), row_map),
            ],
            # One lane-dense (8,128) partial-sum block per split; it stays resident
            # across the "arbitrary" axis and doubles as the accumulator.
            out_specs=pl.BlockSpec((SUBLANES, LANES), lambda c, i: (c, 0)),
        ),
        compiler_params=pltpu.CompilerParams(
            dimension_semantics=("parallel", "arbitrary"),
            vmem_limit_bytes=32 << 20,   # headroom over v5e's 16 MiB scoped default
        ),
    )(pred2, true2)
    # Final cross-lane/sublane reduction of 2*(8,128) partials + mean scaling: trivial XLA op.
    return jnp.sum(out) * (1.0 / total)


def _reference(pred, true, gamma=GAMMA, alpha=ALPHA):
    x = pred.astype(jnp.float32)
    t = true.astype(jnp.float32)
    bce = jnp.maximum(x, 0.0) - x * t + jnp.log1p(jnp.exp(-jnp.abs(x)))
    p = jax.nn.sigmoid(x)
    af = t * alpha + (1.0 - t) * (1.0 - alpha)
    mf = jnp.abs(t - p) ** gamma
    return jnp.mean(bce * af * mf)


if __name__ == "__main__":
    key = jax.random.PRNGKey(0)
    k1, k2, k3, k4 = jax.random.split(key, 4)

    # Small NCHW shape, as the PyTorch conv head would produce (single-block path).
    pred = jax.random.normal(k1, (2, 4, 16, 16), dtype=jnp.float32)
    true = jax.random.uniform(k2, (2, 4, 16, 16), dtype=jnp.float32)  # soft labels (QFL)

    out = jax.block_until_ready(qfocal_loss(pred, true))
    ref = _reference(pred, true)
    assert jnp.allclose(out, ref, rtol=1e-5, atol=1e-7), (out, ref)

    # Also exercise the tiled path: bf16 inputs, ragged total (lane pad), odd tile
    # count (phantom step), and a partial final tile (gated mask).
    pred_big = jax.random.normal(k3, (5, 3, 333, 257), dtype=jnp.bfloat16)
    true_big = jax.random.uniform(k4, (5, 3, 333, 257), dtype=jnp.bfloat16)
    out_big = jax.block_until_ready(qfocal_loss(pred_big, true_big))
    ref_big = _reference(pred_big, true_big)
    assert jnp.allclose(out_big, ref_big, rtol=2e-4, atol=1e-6), (out_big, ref_big)

    print("KERNEL_OK")
</pallas_src>

<mosaic_0001>
module attributes {stable_mosaic.version = 11 : i64} {
  func.func @_qfocal_single_kernel(%arg0: memref<16x128xf32, #tpu.memory_space<vmem>>, %arg1: memref<16x128xf32, #tpu.memory_space<vmem>>, %arg2: memref<1x1xf32, #tpu.memory_space<vmem>>) attributes {dimension_semantics = [], scalar_prefetch = 0 : i64, scratch_operands = 0 : i64, tpu.core_type = #tpu.core_type<tc>} {
    %c0 = arith.constant 0 : index
    %c0_0 = arith.constant 0 : index
    %0 = vector.load %arg0[%c0, %c0_0] : memref<16x128xf32, #tpu.memory_space<vmem>>, vector<16x128xf32>
    %c0_1 = arith.constant 0 : index
    %c0_2 = arith.constant 0 : index
    %1 = vector.load %arg1[%c0_1, %c0_2] : memref<16x128xf32, #tpu.memory_space<vmem>>, vector<16x128xf32>
    %2 = math.absf %0 : vector<16x128xf32>
    %cst = arith.constant 0.000000e+00 : f32
    %3 = vector.broadcast %cst : f32 to vector<16x128xf32>
    %4 = arith.subf %3, %2 : vector<16x128xf32>
    %5 = math.exp %4 : vector<16x128xf32>
    %cst_3 = arith.constant 0.000000e+00 : f32
    %6 = vector.broadcast %cst_3 : f32 to vector<16x128xf32>
    %7 = arith.maximumf %0, %6 : vector<16x128xf32>
    %8 = arith.mulf %0, %1 : vector<16x128xf32>
    %9 = arith.subf %7, %8 : vector<16x128xf32>
    %10 = math.log1p %5 : vector<16x128xf32>
    %11 = arith.addf %9, %10 : vector<16x128xf32>
    %cst_4 = arith.constant 1.000000e+00 : f32
    %12 = vector.broadcast %cst_4 : f32 to vector<16x128xf32>
    %13 = arith.addf %12, %5 : vector<16x128xf32>
    %cst_5 = arith.constant 1.000000e+00 : f32
    %14 = vector.broadcast %cst_5 : f32 to vector<16x128xf32>
    %15 = arith.divf %14, %13 : vector<16x128xf32>
    %cst_6 = arith.constant 0.000000e+00 : f32
    %16 = vector.broadcast %cst_6 : f32 to vector<16x128xf32>
    %17 = arith.cmpf oge, %0, %16 : vector<16x128xf32>
    %18 = arith.mulf %5, %15 : vector<16x128xf32>
    %19 = arith.select %17, %15, %18 : vector<16x128xi1>, vector<16x128xf32>
    %cst_7 = arith.constant -5.000000e-01 : f32
    %20 = vector.broadcast %cst_7 : f32 to vector<16x128xf32>
    %21 = arith.mulf %1, %20 : vector<16x128xf32>
    %cst_8 = arith.constant 7.500000e-01 : f32
    %22 = vector.broadcast %cst_8 : f32 to vector<16x128xf32>
    %23 = arith.addf %21, %22 : vector<16x128xf32>
    %24 = arith.subf %1, %19 : vector<16x128xf32>
    %25 = math.absf %24 : vector<16x128xf32>
    %26 = math.sqrt %25 : vector<16x128xf32>
    %27 = arith.mulf %25, %26 : vector<16x128xf32>
    %28 = arith.mulf %11, %23 : vector<16x128xf32>
    %29 = arith.mulf %28, %27 : vector<16x128xf32>
    %30 = vector.shape_cast %29 : vector<16x128xf32> to vector<1x16x128xf32>
    %cst_9 = arith.constant dense<0.000000e+00> : vector<1xf32>
    %31 = vector.multi_reduction <add>, %30, %cst_9 [1, 2] : vector<1x16x128xf32> to vector<1xf32>
    %32 = vector.shape_cast %31 : vector<1xf32> to vector<1x1x1xf32>
    %33 = vector.extract %32[0, 0, 0] : f32 from vector<1x1x1xf32>
    %34 = vector.broadcast %33 : f32 to vector<1x1xf32>
    %cst_10 = arith.constant 4.8828125E-4 : f32
    %35 = vector.broadcast %cst_10 : f32 to vector<1x1xf32>
    %36 = arith.mulf %34, %35 : vector<1x1xf32>
    %c0_11 = arith.constant 0 : index
    %c0_12 = arith.constant 0 : index
    %37 = vector.load %arg2[%c0_11, %c0_12] : memref<1x1xf32, #tpu.memory_space<vmem>>, vector<1x1xf32>
    tpu.vector_store %arg2[%c0_11, %c0_12], %36 {strides = array<i32>} : memref<1x1xf32, #tpu.memory_space<vmem>>, vector<1x1xf32>,
    return
  }
}

</mosaic_0001>

<bundles_post_ra>
// kernel: tpu_custom_call.1
= control target key start
LH: loop header
LB: loop body
LE: loop exit
PB: predicated region body
PF: predicated region fallthrough
CT: control target
= control target key end

     0   :  { %7 = vsyncpa [#allocation3], 0  ;;  %s266_s0 = inlined_call_operand.hbm [shape: f32[16,128], index: 0, kind: input, shape index: {}]   ;;  %s267_s1 = inlined_call_operand.hbm [shape: f32[16,128], index: 1, kind: input, shape index: {}]   ;;  %s268_s2 = inlined_call_operand.hbm [shape: f32[1,1], index: 2, kind: output, shape index: {}]  }
   0x1   :  { %8 = vsyncpa [#allocation6], 0 }
   0x2   :  { %9 = vsyncpa [#allocation4], 0  ;;  %s237_s9 = smov [#allocation2]  }
   0x3   :  { %s15_s10 = sshll.u32 %s237_s9, 4  ;;  %s16_s10 = int_to_ptr.vmem [resolvable:$true] %s15_s10 }
   0x4   :  { %s179_s11 = scalar_lea.vmem %s16_s10, 256  ;;  %p184_p1 = scmp.lt.s32.totalorder %s16_s10, %s16_s10 }
   0x5   :  { %p180_p0 = scmp.ne.s32.totalorder %s16_s10, %s179_s11  ;;  %p185_p2 = scmp.lt.s32.totalorder %s179_s11, %s179_s11 }
   0x7   :  { %p186_p3 = por %p185_p2, %p184_p1 }
   0x9   :  { %p187_p4 = pnand %p186_p3, %p180_p0 }
   0xb   :  { %190 = shalt.err (!%p187_p4)
}
   0xc   :  { %s238_s12 = smov 128   ;;  %s239_s13 = smov 8  }
   0xd   :  { %21 = dma.hbm_to_vmem [thread:$0]  %s266_s0, 256, %s16_s10, [#allocation3], %s238_s12, %s238_s12, %s239_s13  }
   0xe   :  { %s240_s16 = smov [#allocation5]  }
   0xf   :  { %s27_s17 = sshll.u32 %s240_s16, 4  ;;  %s28_s17 = int_to_ptr.vmem [resolvable:$true] %s27_s17 }
  0x10   :  { %s199_s18 = scalar_lea.vmem %s28_s17, 256  ;;  %p204_p6 = scmp.lt.s32.totalorder %s28_s17, %s28_s17 }
  0x11   :  { %p200_p5 = scmp.ne.s32.totalorder %s28_s17, %s199_s18  ;;  %p205_p7 = scmp.lt.s32.totalorder %s199_s18, %s199_s18 }
  0x13   :  { %p206_p8 = por %p205_p7, %p204_p6 }
  0x15   :  { %p207_p9 = pnand %p206_p8, %p200_p5 }
  0x17   :  { %210 = shalt.err (!%p207_p9)
}
  0x18   :  { %33 = dma.hbm_to_vmem [thread:$0]  %s267_s1, 256, %s28_s17, [#allocation6], %s238_s12, %s238_s12, %s239_s13  }
  0x19   :  { %231 = dma.done.wait [#allocation3], 256  }
  0x1a   :  { %232 = vsyncadd [#allocation3], 4294967040 }
  0x1b   :  { %233 = dma.done.wait [#allocation6], 256  }
  0x1c   :  { %234 = vsyncadd [#allocation6], 4294967040  ;;  %v40_v0 = vld [vmem:[#allocation2] sm:$0xff]  ;;  %v41_v1 = vld [vmem:[#allocation2 + $0x8] sm:$0xff]  ;;  %s241_s0 = smov [#allocation7]   ;;  %vm130_vm8 = vcmask 0  }
  0x1d   :  { %v44_v2 = vand.u32 2147483647, %v40_v0  ;;  %v45_v3 = vand.u32 2147483647, %v41_v1  ;;  %vm84_vm0 = vcmp.ge.f32.partialorder %v40_v0, 0.0  ;;  %v42_v14 = vld [vmem:[#allocation5] sm:$0xff] }
  0x1e   :  { %vm85_vm1 = vcmp.ge.f32.partialorder %v41_v1, 0.0  ;;  %v43_v16 = vld [vmem:[#allocation5 + $0x8] sm:$0xff]  ;;  %v52_v32 = vmax.f32 %v40_v0, 0.0  ;;  %v54_v33 = vmul.f32 %v42_v14, %v40_v0  ;;  %v53_v34 = vmax.f32 %v41_v1, 0.0  ;;  %s138_s1 = sshll.u32 %s241_s0, 4  ;;  %s139_s1 = int_to_ptr.vmem [resolvable:$true] %s138_s1 }
  0x1f   :  { %v46_v4 = vsub.f32 0.0, %v44_v2  ;;  %v47_v5 = vsub.f32 0.0, %v45_v3  ;;  %v55_v35 = vmul.f32 %v43_v16, %v41_v1  ;;  %v90_v41 = vmul.f32 -0.5, %v42_v14  ;;  %s211_s22 = scalar_lea.vmem %s139_s1, 16  ;;  %s215_s23 = scalar_lea.vmem %s139_s1, 32 }
  0x20   :  { %v56_v40 = vsub.f32 %v52_v32, %v54_v33  ;;  %v91_v44 = vmul.f32 -0.5, %v43_v16  ;;  %p212_p10 = scmp.ne.s32.totalorder %s139_s1, %s211_s22  ;;  %p216_p11 = scmp.lt.s32.totalorder %s139_s1, %s139_s1 }
  0x21   :  { %v48_v6 = vmul.f32 1.442695, %v46_v4  ;;  %v50_v7 = vmul.f32 1.442695, %v47_v5  ;;  %v57_v42 = vsub.f32 %v53_v34, %v55_v35  ;;  %v92_v47 = vadd.f32 0.75, %v90_v41  ;;  %p217_p12 = scmp.lt.s32.totalorder %s215_s23, %s211_s22 }
  0x22   :  { %v93_v50 = vadd.f32 0.75, %v91_v44 }
  0x23   :  { %155 = vpow2.f32 %v48_v6  ;;  %p218_p13 = por %p217_p12, %p216_p11 }
  0x24   :  { %157 = vpow2.f32 %v50_v7 }
  0x25   :  { %p219_p0 = pnand %p218_p13, %p212_p10 }
  0x30   :  { %v156_v8 = vpop.eup %155 }
  0x31   :  { %v158_v9 = vpop.eup %157  ;;  %v58_v10 = vadd.f32 1.0, %v156_v8  ;;  %v61_v21 = vmul.f32 -0.5, %v156_v8  ;;  %v64_v28 = vand.u32 2147483647, %v156_v8 }
  0x32   :  { %v67_v11 = vadd.f32 1.0, %v158_v9  ;;  %v70_v23 = vmul.f32 -0.5, %v158_v9  ;;  %v73_v31 = vand.u32 2147483647, %v158_v9 }
  0x33   :  { %159 = vrcp.f32 %v58_v10  ;;  %v62_v26 = vadd.f32 1.0, %v61_v21  ;;  %vm65_vm2 = vcmp.lt.f32.partialorder %v64_v28, 0.0004427343 }
  0x34   :  { %161 = vrcp.f32 %v67_v11  ;;  %v71_v29 = vadd.f32 1.0, %v70_v23  ;;  %vm74_vm3 = vcmp.lt.f32.partialorder %v73_v31, 0.0004427343 }
  0x35   :  { %163 = vlog2.f32 %v58_v10  ;;  %v63_v37 = vmul.f32 %v156_v8, %v62_v26 }
  0x36   :  { %165 = vlog2.f32 %v67_v11  ;;  %v72_v39 = vmul.f32 %v158_v9, %v71_v29 }
  0x40   :  { %v160_v12 = vpop.eup %159 }
  0x41   :  { %v162_v13 = vpop.eup %161  ;;  %v86_v15 = vmul.f32 %v160_v12, %v156_v8 }
  0x42   :  { %v87_v17 = vmul.f32 %v162_v13, %v158_v9  ;;  %v164_v27 = vpop.eup %163 }
  0x43   :  { %v88_v18 = vsel %vm84_vm0, %v160_v12, %v86_v15  ;;  %v166_v30 = vpop.eup %165  ;;  %v60_v36 = vmul.f32 0.6931472, %v164_v27 }
  0x44   :  { %v89_v19 = vsel %vm85_vm1, %v162_v13, %v87_v17  ;;  %v94_v20 = vsub.f32 %v42_v14, %v88_v18  ;;  %v69_v38 = vmul.f32 0.6931472, %v166_v30 }
  0x45   :  { %v95_v22 = vsub.f32 %v43_v16, %v89_v19  ;;  %v66_v43 = vsel %vm65_vm2, %v63_v37, %v60_v36 }
  0x46   :  { %v96_v24 = vand.u32 2147483647, %v94_v20  ;;  %v75_v45 = vsel %vm74_vm3, %v72_v39, %v69_v38  ;;  %v76_v46 = vadd.f32 %v66_v43, %v56_v40 }
  0x47   :  { %v97_v25 = vand.u32 2147483647, %v95_v22  ;;  %v77_v49 = vadd.f32 %v75_v45, %v57_v42 }
  0x48   :  { %167 = vrsqrt.f32 %v96_v24  ;;  %vm100_vm4 = vcmp.eq.f32.partialorder %v96_v24, inf  ;;  %v103_v51 = vand.u32 2147483648, %v96_v24  ;;  %vm102_vm5 = vcmp.eq.f32.partialorder %v96_v24, 0.0 }
  0x49   :  { %169 = vrsqrt.f32 %v97_v25  ;;  %vm107_vm6 = vcmp.eq.f32.partialorder %v97_v25, inf  ;;  %v110_v54 = vand.u32 2147483648, %v97_v25  ;;  %vm109_vm7 = vcmp.eq.f32.partialorder %v97_v25, 0.0 }
  0x4a   :  { %v114_v57 = vmul.f32 %v92_v47, %v76_v46  ;;  %v115_v60 = vmul.f32 %v93_v50, %v77_v49 }
  0x55   :  { %v168_v48 = vpop.eup %167 }
  0x56   :  { %v170_v52 = vpop.eup %169  ;;  %v99_v53 = vmul.f32 %v168_v48, %v96_v24 }
  0x57   :  { %v106_v55 = vmul.f32 %v170_v52, %v97_v25 }
  0x58   :  { %v101_v56 = vsel %vm100_vm4, %v96_v24, %v99_v53 }
  0x59   :  { %v104_v58 = vsel %vm102_vm5, %v103_v51, %v101_v56  ;;  %v108_v59 = vsel %vm107_vm6, %v97_v25, %v106_v55 }
  0x5a   :  { %v111_v61 = vsel %vm109_vm7, %v110_v54, %v108_v59  ;;  %v112_v62 = vmul.f32 %v104_v58, %v96_v24 }
  0x5b   :  { %v113_v63 = vmul.f32 %v111_v61, %v97_v25 }
  0x5c   :  { %v116_v0 = vmul.f32 %v114_v57, %v112_v62 }
  0x5d   :  { %v117_v1 = vmul.f32 %v115_v60, %v113_v63 }
  0x5f   :  { %v118_v2 = vadd.f32 %v117_v1, %v116_v0 }
  0x61   :  { %119 = vadd.xlane.f32.xlu0 %v118_v2 }
  0xea   :  { %v120_v3 = vpop.xlane.xlu0 %119 }
  0xeb   :  { %v121_v4 = vrot.slane %v120_v3, 4 }
  0xed   :  { %v122_v5 = vadd.f32 %v121_v4, %v120_v3 }
  0xef   :  { %v123_v6 = vrot.slane %v122_v5, 2 }
  0xf1   :  { %v124_v7 = vadd.f32 %v123_v6, %v122_v5 }
  0xf3   :  { %v125_v8 = vrot.slane %v124_v7, 1 }
  0xf5   :  { %v126_v9 = vadd.f32 %v125_v8, %v124_v7 }
  0xf7   :  { %148 = vpush %v126_v9 }
 0x128   :  { %s149_s21 = spop %148 }
 0x129   :  { %v128_v10 = vstv %s149_s21 }
 0x12a   :  { %v129_v11 = vmul.f32 0.00048828125, %v128_v10 }
 0x12c   :  { %131 = vst.msk [vmem:[#allocation7] sm:$0x1] %vm130_vm8, %v129_v11 }
 0x12d   :  { %222 = shalt.err (!%p219_p0)
}
 0x12e   :  { %141 = dma.vmem_to_hbm [thread:$0]  %s139_s1, 16, %s268_s2, [#allocation4]  }
 0x12f   :  { %235 = dma.done.wait [#allocation4], 16  }
 0x130   :  { %236 = vsyncadd [#allocation4], 4294967280 }
 0x131   :  { %145 = vsyncpa [#allocation3], 1 }
 0x132   :  { %146 = vsyncpa [#allocation6], 1 }
 0x133   :  { %147 = vsyncpa [#allocation4], 1 }

</bundles_post_ra>
